<compile_context>
chip_gen: v7x
topology: tpu7x:2x2x1
jax: 0.10.0
libtpu: 0.0.40
codegen_flags: <defaults>
</compile_context>

<pallas_src>
import jax
import jax.numpy as jnp
from jax.experimental import pallas as pl
from jax.experimental.pallas import tpu as pltpu

_LANE = 128
_SUBLANE = 8


def dqn_kernel(x_ref, w1_ref, b1_ref, w2_ref, b2_ref, w3_ref, b3_ref, o_ref):
    cdt = w1_ref.dtype
    # layer1 + ReLU  (x cast to the MXU compute dtype in-kernel; f32 accum)
    h1 = jnp.dot(x_ref[...].astype(cdt), w1_ref[...],
                 preferred_element_type=jnp.float32)
    h1 = jnp.maximum(h1 + b1_ref[...], 0.0)
    # layer2 + ReLU
    h2 = jnp.dot(h1.astype(cdt), w2_ref[...],
                 preferred_element_type=jnp.float32)
    h2 = jnp.maximum(h2 + b2_ref[...], 0.0)
    # layer3 (no activation).  Compute (tb, action_pad) then store transposed
    # so the output block is (action_pad, tb): lane-dense, narrow writeback.
    out = jnp.dot(h2.astype(cdt), w3_ref[...],
                  preferred_element_type=jnp.float32) + b3_ref[...]
    o_ref[...] = out.T.astype(o_ref.dtype)


def _round_up(x, m):
    return pl.cdiv(x, m) * m


def _choose_batch_tile(B, batch_tile):
    """Big overhead-amortizing tile; lane-multiple when multi-step; even
    number of grid steps for v7x's two TensorCores."""
    if B < 2 * _LANE:
        return B                       # tiny batch: single full-extent block
    tb = max(_LANE, (min(batch_tile, B) // _LANE) * _LANE)
    n = pl.cdiv(B, tb)
    if n % 2 == 1:                     # keep step count even (v7x megacore)
        tb_even = _round_up(pl.cdiv(B, n + 1), _LANE)
        if pl.cdiv(B, tb_even) % 2 == 0:
            tb = tb_even
    return tb


def dqn_forward(x, params, *, batch_tile=512, compute_dtype=jnp.bfloat16):
    """x: (B, state_size) f32. params: w1,b1,w2,b2,w3,b3 in (in, out) layout.

    Returns (B, action_size) f32 Q-values, matching the PyTorch DQN.forward.
    Use compute_dtype=jnp.float32 for exact-f32 evaluation paths.
    """
    w1, b1, w2, b2, w3, b3 = (params["w1"], params["b1"], params["w2"],
                              params["b2"], params["w3"], params["b3"])
    B, state_size = x.shape
    hidden = w1.shape[1]
    action_size = w3.shape[1]

    # Pad layer-3 output columns to a sublane multiple (>=8).  Padded columns
    # are zero-weight/zero-bias and become throwaway rows of the transposed
    # output (sliced off below -- a pass over only an (8, B) array).
    action_pad = max(_SUBLANE, _round_up(action_size, _SUBLANE))
    w3p = jnp.zeros((hidden, action_pad), compute_dtype).at[:, :action_size].set(
        w3.astype(compute_dtype))
    b3p = jnp.zeros((1, action_pad), jnp.float32).at[:, :action_size].set(
        b3.reshape(1, -1).astype(jnp.float32))

    w1c = w1.astype(compute_dtype)
    w2c = w2.astype(compute_dtype)
    b1c = b1.reshape(1, -1).astype(jnp.float32)
    b2c = b2.reshape(1, -1).astype(jnp.float32)

    tb = _choose_batch_tile(B, batch_tile)
    n_steps = pl.cdiv(B, tb)

    stream_in = lambda i: (i, 0)      # x tiles march down the batch axis
    stream_out = lambda i: (0, i)     # transposed output: batch on lane axis
    resident = lambda i: (0, 0)       # weights & biases stay put in VMEM

    # NOTE: the six resident blocks could take pipeline_mode=pl.Buffered(1) to
    # drop their unused second buffer; skipped as a minor, low-risk-only win.
    out_t = pl.pallas_call(
        dqn_kernel,
        out_shape=jax.ShapeDtypeStruct((action_pad, B), jnp.float32),
        grid=(n_steps,),
        in_specs=[
            pl.BlockSpec((tb, state_size), stream_in),      # x (f32, uncast)
            pl.BlockSpec((state_size, hidden), resident),   # w1
            pl.BlockSpec((1, hidden), resident),            # b1
            pl.BlockSpec((hidden, hidden), resident),       # w2
            pl.BlockSpec((1, hidden), resident),            # b2
            pl.BlockSpec((hidden, action_pad), resident),   # w3 (col-padded)
            pl.BlockSpec((1, action_pad), resident),        # b3 (col-padded)
        ],
        out_specs=pl.BlockSpec((action_pad, tb), stream_out),
        compiler_params=pltpu.CompilerParams(
            dimension_semantics=("parallel",)),
    )(x, w1c, b1c, w2c, b2c, w3p, b3p)

    # (action_pad, B) -> (B, action_size): tiny post-pass (<= 8*B floats).
    return out_t[:action_size, :].T


def init_dqn_params(key, state_size, action_size, hidden=128):
    """Deterministic init mimicking PyTorch nn.Linear default U(+/- 1/sqrt(fan_in))."""
    def linear_init(k, fan_in, fan_out):
        kw, kb = jax.random.split(k)
        bound = 1.0 / jnp.sqrt(jnp.float32(fan_in))
        w = jax.random.uniform(kw, (fan_in, fan_out), jnp.float32, -bound, bound)
        b = jax.random.uniform(kb, (fan_out,), jnp.float32, -bound, bound)
        return w, b

    k1, k2, k3 = jax.random.split(key, 3)
    w1, b1 = linear_init(k1, state_size, hidden)
    w2, b2 = linear_init(k2, hidden, hidden)
    w3, b3 = linear_init(k3, hidden, action_size)
    return {"w1": w1, "b1": b1, "w2": w2, "b2": b2, "w3": w3, "b3": b3}


def dqn_reference(x, params):
    h1 = jnp.maximum(x @ params["w1"] + params["b1"], 0.0)
    h2 = jnp.maximum(h1 @ params["w2"] + params["b2"], 0.0)
    return h2 @ params["w3"] + params["b3"]


if __name__ == "__main__":
    key = jax.random.PRNGKey(0)
    k_param, k_x, k_x2 = jax.random.split(key, 3)

    state_size = 4     # CartPole observation dim
    action_size = 2    # CartPole actions
    batch = 8

    params = init_dqn_params(k_param, state_size, action_size)
    x = jax.random.normal(k_x, (batch, state_size), dtype=jnp.float32)
    ref = dqn_reference(x, params)

    # 1) f32 path: verifies kernel structure (grid, transposed output, bias bcast).
    out_f32 = jax.block_until_ready(
        dqn_forward(x, params, compute_dtype=jnp.float32))
    assert out_f32.shape == (batch, action_size)
    assert jnp.allclose(out_f32, ref, atol=1e-4, rtol=1e-4)

    # 2) Default bf16-MXU path (f32 accumulation): matches within bf16 precision.
    out_bf16 = jax.block_until_ready(dqn_forward(x, params))
    assert out_bf16.shape == (batch, action_size)
    assert jnp.allclose(out_bf16, ref, atol=5e-2, rtol=5e-2)

    # 3) Larger, non-multiple batch: exercises the multi-step (even) grid and
    #    the masked ragged boundary tile (no wrapper-side padding of x).
    big_batch = 300
    xb = jax.random.normal(k_x2, (big_batch, state_size), dtype=jnp.float32)
    out_big = jax.block_until_ready(dqn_forward(xb, params))
    assert out_big.shape == (big_batch, action_size)
    assert jnp.allclose(out_big, dqn_reference(xb, params), atol=5e-2, rtol=5e-2)

    print("KERNEL_OK")
</pallas_src>

<mosaic_0001>
module attributes {stable_mosaic.version = 11 : i64} {
  func.func @dqn_kernel(%arg0: i32, %arg1: memref<8x4xf32, #tpu.memory_space<vmem>>, %arg2: memref<4x128xf32, #tpu.memory_space<vmem>>, %arg3: memref<1x128xf32, #tpu.memory_space<vmem>>, %arg4: memref<128x128xf32, #tpu.memory_space<vmem>>, %arg5: memref<1x128xf32, #tpu.memory_space<vmem>>, %arg6: memref<128x8xf32, #tpu.memory_space<vmem>>, %arg7: memref<1x8xf32, #tpu.memory_space<vmem>>, %arg8: memref<8x8xf32, #tpu.memory_space<vmem>>) attributes {dimension_semantics = [#tpu.dimension_semantics<parallel>], iteration_bounds = array<i64: 1>, scalar_prefetch = 0 : i64, scratch_operands = 0 : i64, tpu.core_type = #tpu.core_type<tc>, window_params = [{transform_indices = @transform_0, window_bounds = array<i64: 8, 4>}, {pipeline_mode = #tpu.pipeline_mode<synchronous>, transform_indices = @transform_1, window_bounds = array<i64: 4, 128>}, {pipeline_mode = #tpu.pipeline_mode<synchronous>, transform_indices = @transform_2, window_bounds = array<i64: 1, 128>}, {pipeline_mode = #tpu.pipeline_mode<synchronous>, transform_indices = @transform_3, window_bounds = array<i64: 128, 128>}, {pipeline_mode = #tpu.pipeline_mode<synchronous>, transform_indices = @transform_4, window_bounds = array<i64: 1, 128>}, {pipeline_mode = #tpu.pipeline_mode<synchronous>, transform_indices = @transform_5, window_bounds = array<i64: 128, 8>}, {pipeline_mode = #tpu.pipeline_mode<synchronous>, transform_indices = @transform_6, window_bounds = array<i64: 1, 8>}, {transform_indices = @transform_7, window_bounds = array<i64: 8, 8>}]} {
    %c0 = arith.constant 0 : index
    %c0_0 = arith.constant 0 : index
    %0 = vector.load %arg1[%c0, %c0_0] : memref<8x4xf32, #tpu.memory_space<vmem>>, vector<8x4xf32>
    %c0_1 = arith.constant 0 : index
    %c0_2 = arith.constant 0 : index
    %1 = vector.load %arg2[%c0_1, %c0_2] : memref<4x128xf32, #tpu.memory_space<vmem>>, vector<4x128xf32>
    %cst = arith.constant dense<0.000000e+00> : vector<8x128xf32>
    %2 = tpu.matmul %0, %1, %cst {dimension_numbers = #tpu.dot_dimension_numbers<[1], [0], [0], [1], [0, 0, 1, 1], [], []>} : vector<8x4xf32>, vector<4x128xf32>, vector<8x128xf32> -> vector<8x128xf32>
    %c0_3 = arith.constant 0 : index
    %c0_4 = arith.constant 0 : index
    %3 = vector.load %arg3[%c0_3, %c0_4] : memref<1x128xf32, #tpu.memory_space<vmem>>, vector<1x128xf32>
    %4 = vector.broadcast %3 : vector<1x128xf32> to vector<8x128xf32>
    %5 = arith.addf %2, %4 : vector<8x128xf32>
    %cst_5 = arith.constant 0.000000e+00 : f32
    %6 = vector.broadcast %cst_5 : f32 to vector<8x128xf32>
    %7 = arith.maximumf %5, %6 : vector<8x128xf32>
    %c0_6 = arith.constant 0 : index
    %c0_7 = arith.constant 0 : index
    %8 = vector.load %arg4[%c0_6, %c0_7] : memref<128x128xf32, #tpu.memory_space<vmem>>, vector<128x128xf32>
    %cst_8 = arith.constant dense<0.000000e+00> : vector<8x128xf32>
    %9 = tpu.matmul %7, %8, %cst_8 {dimension_numbers = #tpu.dot_dimension_numbers<[1], [0], [0], [1], [0, 0, 1, 1], [], []>} : vector<8x128xf32>, vector<128x128xf32>, vector<8x128xf32> -> vector<8x128xf32>
    %c0_9 = arith.constant 0 : index
    %c0_10 = arith.constant 0 : index
    %10 = vector.load %arg5[%c0_9, %c0_10] : memref<1x128xf32, #tpu.memory_space<vmem>>, vector<1x128xf32>
    %11 = vector.broadcast %10 : vector<1x128xf32> to vector<8x128xf32>
    %12 = arith.addf %9, %11 : vector<8x128xf32>
    %cst_11 = arith.constant 0.000000e+00 : f32
    %13 = vector.broadcast %cst_11 : f32 to vector<8x128xf32>
    %14 = arith.maximumf %12, %13 : vector<8x128xf32>
    %c0_12 = arith.constant 0 : index
    %c0_13 = arith.constant 0 : index
    %15 = vector.load %arg6[%c0_12, %c0_13] : memref<128x8xf32, #tpu.memory_space<vmem>>, vector<128x8xf32>
    %cst_14 = arith.constant dense<0.000000e+00> : vector<8x8xf32>
    %16 = tpu.matmul %14, %15, %cst_14 {dimension_numbers = #tpu.dot_dimension_numbers<[1], [0], [0], [1], [0, 0, 1, 1], [], []>} : vector<8x128xf32>, vector<128x8xf32>, vector<8x8xf32> -> vector<8x8xf32>
    %c0_15 = arith.constant 0 : index
    %c0_16 = arith.constant 0 : index
    %17 = vector.load %arg7[%c0_15, %c0_16] : memref<1x8xf32, #tpu.memory_space<vmem>>, vector<1x8xf32>
    %18 = vector.broadcast %17 : vector<1x8xf32> to vector<8x8xf32>
    %19 = arith.addf %16, %18 : vector<8x8xf32>
    %20 = tpu.transpose %19, [1, 0] : vector<8x8xf32> -> vector<8x8xf32>
    %c0_17 = arith.constant 0 : index
    %c0_18 = arith.constant 0 : index
    %21 = vector.load %arg8[%c0_17, %c0_18] : memref<8x8xf32, #tpu.memory_space<vmem>>, vector<8x8xf32>
    tpu.vector_store %arg8[%c0_17, %c0_18], %20 {strides = array<i32>} : memref<8x8xf32, #tpu.memory_space<vmem>>, vector<8x8xf32>,
    return
  }
  func.func @transform_0(%arg0: i32) -> (i32, i32) {
    %c0_i32 = arith.constant 0 : i32
    %c0_i32_0 = arith.constant 0 : i32
    return %arg0, %c0_i32 : i32, i32
  }
  func.func @transform_1(%arg0: i32) -> (i32, i32) {
    %c0_i32 = arith.constant 0 : i32
    %c0_i32_0 = arith.constant 0 : i32
    %c0_i32_1 = arith.constant 0 : i32
    return %c0_i32, %c0_i32_0 : i32, i32
  }
  func.func @transform_2(%arg0: i32) -> (i32, i32) {
    %c0_i32 = arith.constant 0 : i32
    %c0_i32_0 = arith.constant 0 : i32
    %c0_i32_1 = arith.constant 0 : i32
    return %c0_i32, %c0_i32_0 : i32, i32
  }
  func.func @transform_3(%arg0: i32) -> (i32, i32) {
    %c0_i32 = arith.constant 0 : i32
    %c0_i32_0 = arith.constant 0 : i32
    %c0_i32_1 = arith.constant 0 : i32
    return %c0_i32, %c0_i32_0 : i32, i32
  }
  func.func @transform_4(%arg0: i32) -> (i32, i32) {
    %c0_i32 = arith.constant 0 : i32
    %c0_i32_0 = arith.constant 0 : i32
    %c0_i32_1 = arith.constant 0 : i32
    return %c0_i32, %c0_i32_0 : i32, i32
  }
  func.func @transform_5(%arg0: i32) -> (i32, i32) {
    %c0_i32 = arith.constant 0 : i32
    %c0_i32_0 = arith.constant 0 : i32
    %c0_i32_1 = arith.constant 0 : i32
    return %c0_i32, %c0_i32_0 : i32, i32
  }
  func.func @transform_6(%arg0: i32) -> (i32, i32) {
    %c0_i32 = arith.constant 0 : i32
    %c0_i32_0 = arith.constant 0 : i32
    %c0_i32_1 = arith.constant 0 : i32
    return %c0_i32, %c0_i32_0 : i32, i32
  }
  func.func @transform_7(%arg0: i32) -> (i32, i32) {
    %c0_i32 = arith.constant 0 : i32
    %c0_i32_0 = arith.constant 0 : i32
    return %c0_i32, %arg0 : i32, i32
  }
}

</mosaic_0001>

<bundles_post_ra>
// kernel: tpu_custom_call.1
= control target key start
LH: loop header
LB: loop body
LE: loop exit
PB: predicated region body
PF: predicated region fallthrough
CT: control target
= control target key end

     0   :  { %vm40_vm0 = vcmask 1043456   ;;  %v542_v2 = vmov 0.0   ;;  %vm543_vm1 = vmmov 0   ;;  %vm36_vm2 = vcmask 31744   ;;  %s728_s0 = inlined_call_operand.vmem [shape: f32[8,4], index: 0, kind: input, shape index: {}]   ;;  %s729_s1 = inlined_call_operand.vmem [shape: f32[4,128], index: 1, kind: input, shape index: {}]   ;;  %s730_s2 = inlined_call_operand.vmem [shape: f32[1,128], index: 2, kind: input, shape index: {}]   ;;  %s731_s3 = inlined_call_operand.vmem [shape: f32[128,128], index: 3, kind: input, shape index: {}]   ;;  %s732_s4 = inlined_call_operand.vmem [shape: f32[1,128], index: 4, kind: input, shape index: {}]   ;;  %s733_s5 = inlined_call_operand.vmem [shape: f32[128,8], index: 5, kind: input, shape index: {}]   ;;  %s734_s6 = inlined_call_operand.vmem [shape: f32[1,8], index: 6, kind: input, shape index: {}]   ;;  %s735_s7 = inlined_call_operand.hbm [shape: f32[8,8], index: 7, kind: output, shape index: {}]  }
   0x1   :  { %v28_v0 = vld [vmem:[%s729_s1] sm:$0xf]  ;;  %391 = vmatprep.subr.mxu0 %v542_v2  ;;  %393 = vmatprep.mubr.msk.f32.mxu0 %vm543_vm1, %v542_v2  ;;  %v116_v4 = vld [vmem:[%s731_s3 + $0x8] sm:$0xff]  ;;  %v117_v5 = vld [vmem:[%s731_s3 + $0x10] sm:$0xff]  ;;  %v544_v6 = vmov 0.0|0.0  }
   0x2   :  { %v27_v1 = vld [vmem:[%s728_s0] sm:$0xff]  ;;  %392 = vmatpush3.msk.msra.mxu0 %vm40_vm0, %v28_v0  ;;  %466 = vmatprep.subr.bf16.mxu1 %v544_v6  ;;  %v118_v8 = vld [vmem:[%s731_s3 + $0x18] sm:$0xff]  ;;  %v120_v11 = vld [vmem:[%s731_s3 + $0x28] sm:$0xff] }
   0x3   :  { %v115_v3 = vld [vmem:[%s731_s3] sm:$0xff]  ;;  %394 = vmatmul.mubr.msk.f32.vlgmr.msra.gmra.mrb[0].mxu0 %vm36_vm2, %v27_v1  ;;  %428 = vmatprep.mubr.msk.f32.mxu1 %vm543_vm1, %v542_v2  ;;  %v470_v9 = vpack.c.bf16 %v118_v8, %v117_v5 }
   0x4   :  { %v467_v7 = vpack.c.bf16 %v116_v4, %v115_v3  ;;  %490 = vmatprep.subr.bf16.mxu0 %v544_v6  ;;  %v119_v10 = vld [vmem:[%s731_s3 + $0x20] sm:$0xff]  ;;  %463 = vmatprep.mubr.msk.f32.mxu0 %vm543_vm1, %v542_v2 }
   0x6   :  { %468 = vmatpush3.bf16.msra.mxu1 %v467_v7 }
   0x7   :  { %469 = vmatprep.subr.bf16.mxu1 %v544_v6 }
   0x8   :  { %12 = vsyncpa [#allocation3], 0  ;;  %v473_v12 = vpack.c.bf16 %v120_v11, %v119_v10  ;;  %v121_v13 = vld [vmem:[%s731_s3 + $0x30] sm:$0xff]  ;;  %v122_v14 = vld [vmem:[%s731_s3 + $0x38] sm:$0xff]  ;;  %vm334_vm3 = vcmask 64512  }
   0x9   :  { %v476_v15 = vpack.c.bf16 %v122_v14, %v121_v13  ;;  %v123_v16 = vld [vmem:[%s731_s3 + $0x40] sm:$0xff]  ;;  %v124_v17 = vld [vmem:[%s731_s3 + $0x48] sm:$0xff]  ;;  %v125_v19 = vld [vmem:[%s731_s3 + $0x50] sm:$0xff] }
   0xa   :  { %471 = vmatpush3.bf16.msra.mxu1 %v470_v9  ;;  %v479_v18 = vpack.c.bf16 %v124_v17, %v123_v16  ;;  %v126_v20 = vld [vmem:[%s731_s3 + $0x58] sm:$0xff]  ;;  %v127_v22 = vld [vmem:[%s731_s3 + $0x60] sm:$0xff]  ;;  %v128_v23 = vld [vmem:[%s731_s3 + $0x68] sm:$0xff] }
   0xb   :  { %472 = vmatprep.subr.bf16.mxu1 %v544_v6  ;;  %v482_v21 = vpack.c.bf16 %v126_v20, %v125_v19  ;;  %v485_v24 = vpack.c.bf16 %v128_v23, %v127_v22  ;;  %v129_v25 = vld [vmem:[%s731_s3 + $0x70] sm:$0xff]  ;;  %v130_v26 = vld [vmem:[%s731_s3 + $0x78] sm:$0xff]  ;;  %v209_v28 = vld [vmem:[%s733_s5] sm:$0xff] }
   0xc   :  { %v488_v27 = vpack.c.bf16 %v130_v26, %v129_v25  ;;  %v210_v29 = vld [vmem:[%s733_s5 + $0x8] sm:$0xff]  ;;  %v211_v30 = vld [vmem:[%s733_s5 + $0x10] sm:$0xff]  ;;  %v212_v32 = vld [vmem:[%s733_s5 + $0x18] sm:$0xff] }
   0xd   :  { %v491_v31 = vpack.c.bf16 %v210_v29, %v209_v28  ;;  %v494_v33 = vpack.c.bf16 %v212_v32, %v211_v30  ;;  %v213_v34 = vld [vmem:[%s733_s5 + $0x20] sm:$0xff]  ;;  %v214_v35 = vld [vmem:[%s733_s5 + $0x28] sm:$0xff]  ;;  %v215_v37 = vld [vmem:[%s733_s5 + $0x30] sm:$0xff] }
   0xe   :  { %474 = vmatpush3.bf16.msra.mxu1 %v473_v12  ;;  %v497_v36 = vpack.c.bf16 %v214_v35, %v213_v34  ;;  %v216_v38 = vld [vmem:[%s733_s5 + $0x38] sm:$0xff]  ;;  %v217_v40 = vld [vmem:[%s733_s5 + $0x40] sm:$0xff]  ;;  %v218_v41 = vld [vmem:[%s733_s5 + $0x48] sm:$0xff] }
   0xf   :  { %475 = vmatprep.subr.bf16.mxu1 %v544_v6  ;;  %492 = vmatpush3.bf16.msra.mxu0 %v491_v31  ;;  %v500_v39 = vpack.c.bf16 %v216_v38, %v215_v37  ;;  %v503_v42 = vpack.c.bf16 %v218_v41, %v217_v40  ;;  %v219_v43 = vld [vmem:[%s733_s5 + $0x50] sm:$0xff]  ;;  %v220_v44 = vld [vmem:[%s733_s5 + $0x58] sm:$0xff]  ;;  %v221_v46 = vld [vmem:[%s733_s5 + $0x60] sm:$0xff] }
  0x10   :  { %493 = vmatprep.subr.bf16.mxu0 %v544_v6  ;;  %v506_v45 = vpack.c.bf16 %v220_v44, %v219_v43  ;;  %v222_v47 = vld [vmem:[%s733_s5 + $0x68] sm:$0xff]  ;;  %v350_v49 = vld [vmem:[%s730_s2] ss:$0 sm:$0xff]  ;;  %v223_v54 = vld [vmem:[%s733_s5 + $0x70] sm:$0xff] }
  0x11   :  { %v509_v48 = vpack.c.bf16 %v222_v47, %v221_v46  ;;  %v224_v55 = vld [vmem:[%s733_s5 + $0x78] sm:$0xff]  ;;  %v353_v57 = vld [vmem:[%s732_s4] ss:$0 sm:$0xff]  ;;  %s545_s5 = smov [#allocation2]  }
  0x12   :  { %477 = vmatpush3.bf16.msra.mxu1 %v476_v15  ;;  %v512_v56 = vpack.c.bf16 %v224_v55, %v223_v54  ;;  %v354_v62 = vld [vmem:[%s734_s6] ss:$0 sm:$0xff]  ;;  %s342_s20 = sshll.u32 %s545_s5, 4  ;;  %s343_s20 = int_to_ptr.vmem [resolvable:$true] %s342_s20 }
  0x13   :  { %478 = vmatprep.subr.bf16.mxu1 %v544_v6  ;;  %495 = vmatpush3.bf16.msra.mxu0 %v494_v33  ;;  %s518_s4 = scalar_lea.vmem %s343_s20, 128  ;;  %p523_p1 = scmp.lt.s32.totalorder %s343_s20, %s343_s20 }
  0x14   :  { %496 = vmatprep.subr.bf16.mxu0 %v544_v6  ;;  %p519_p0 = scmp.ne.s32.totalorder %s343_s20, %s518_s4  ;;  %p524_p2 = scmp.lt.s32.totalorder %s518_s4, %s518_s4 }
  0x16   :  { %480 = vmatpush3.bf16.msra.mxu1 %v479_v18  ;;  %p525_p3 = por %p524_p2, %p523_p1 }
  0x17   :  { %481 = vmatprep.subr.bf16.mxu1 %v544_v6  ;;  %498 = vmatpush3.bf16.msra.mxu0 %v497_v36 }
  0x18   :  { %499 = vmatprep.subr.bf16.mxu0 %v544_v6  ;;  %p526_p4 = pnand %p525_p3, %p519_p0 }
  0x1a   :  { %483 = vmatpush3.bf16.msra.mxu1 %v482_v21 }
  0x1b   :  { %484 = vmatprep.subr.bf16.mxu1 %v544_v6  ;;  %501 = vmatpush3.bf16.msra.mxu0 %v500_v39 }
  0x1c   :  { %502 = vmatprep.subr.bf16.mxu0 %v544_v6 }
  0x1e   :  { %486 = vmatpush3.bf16.msra.mxu1 %v485_v24 }
  0x1f   :  { %487 = vmatprep.subr.bf16.mxu1 %v544_v6  ;;  %504 = vmatpush3.bf16.msra.mxu0 %v503_v42 }
  0x20   :  { %505 = vmatprep.subr.bf16.mxu0 %v544_v6 }
  0x22   :  { %489 = vmatpush3.bf16.msra.mxu1 %v488_v27 }
  0x23   :  { %507 = vmatpush3.bf16.msra.mxu0 %v506_v45 }
  0x24   :  { %508 = vmatprep.subr.bf16.mxu0 %v544_v6 }
  0x27   :  { %510 = vmatpush3.bf16.msra.mxu0 %v509_v48 }
  0x28   :  { %511 = vmatprep.subr.bf16.mxu0 %v544_v6 }
  0x2b   :  { %513 = vmatpush3.bf16.msra.mxu0 %v512_v56 }
  0xd6   :  { %v110_v50 = vpop.f32.mrb[0].mxu0 }
  0xd7   :  { %v111_v51 = vadd.f32 %v350_v49, %v110_v50  ;;  %v395_v52 = vpop.f32.mrb[1].mxu0 }
  0xd9   :  { %v114_v53 = vmax.f32 %v111_v51, 0.0 }
  0xdb   :  { %429 = vmatmul.mubr.f32.vlgmr.msra.gmra.mrb[0].mxu1 %v114_v53 }
 0x1ae   :  { %v204_v58 = vpop.f32.mrb[0].mxu1 }
 0x1af   :  { %v205_v59 = vadd.f32 %v353_v57, %v204_v58  ;;  %v430_v60 = vpop.f32.mrb[1].mxu1 }
 0x1b1   :  { %v208_v61 = vmax.f32 %v205_v59, 0.0 }
 0x1b3   :  { %464 = vmatmul.mubr.f32.vlgmr.msra.gmra.mrb[2].mxu0 %v208_v61 }
 0x286   :  { %v298_v63 = vpop.f32.mrb[2].mxu0 }
 0x287   :  { %v465_v0 = vpop.f32.mrb[3].mxu0  ;;  %v299_v1 = vadd.f32 %v354_v62, %v298_v63 }
 0x289   :  { %302 = vxpose.xlu0.b32.start.end [1/1] (short) (narrow) %v299_v1, 8 }
 0x309   :  { %v318_v2 = vpop.trf.xlu0 }
 0x30a   :  { %335 = vst.msk [vmem:[#allocation2] sm:$0xff] %vm334_vm3, %v318_v2 }
 0x30b   :  { %529 = shalt.err (!%p526_p4)
}
 0x30c   :  { %s530_s6 = scalar_lea.hbm %s735_s7, 128 }
 0x30d   :  { %p531_p5 = scmp.ne.s32.totalorder %s735_s7, %s530_s6  ;;  %p534_p6 = scmp.lt.u32.totalorder %s530_s6, %s735_s7 }
 0x30f   :  { %p536_p7 = pnand %p534_p6, %p531_p5 }
 0x311   :  { %539 = shalt.err (!%p536_p7)
}
 0x312   :  { %345 = dma.vmem_to_hbm [thread:$0]  %s343_s20, 128, %s735_s7, [#allocation3]  }
 0x313   :  { %540 = dma.done.wait [#allocation3], 128  }
 0x314   :  { %541 = vsyncadd [#allocation3], 4294967168 }
 0x315   :  { %349 = vsyncpa [#allocation3], 1 }

</bundles_post_ra>
